<compile_context>
chip_gen: v5e
topology: v5e:2x2
jax: 0.10.0
libtpu: 0.0.40
codegen_flags: <defaults>
</compile_context>

<pallas_src>
import math

import jax
import jax.numpy as jnp
from jax.experimental import pallas as pl
from jax.experimental.pallas import tpu as pltpu


def _round_up(x, m):
    return ((x + m - 1) // m) * m


def _pick_tile(n, cap=512, multiple=8):
    """Largest divisor of n that is a multiple of `multiple` and <= cap."""
    for t in range(min(cap, n), multiple - 1, -1):
        if n % t == 0 and t % multiple == 0:
            return t
    return n   # fall back to the full extent (legal block shape)


# ---------------------------------------------------------------------------
# Kernel 1: shared_conv (3x3 Conv2d, pad=1, no bias) + BN2d(eval, folded) + ReLU
#           fused with  bev_queries = bev_embedding + conv_out
# ---------------------------------------------------------------------------
def _conv_bn_relu_add_kernel(xcol_ref, w_ref, scale_ref, shift_ref, emb_ref, o_ref):
    # xcol_ref: (1, TQ, Kc) bf16, w_ref: (Kc, D) bf16, scale/shift: (1, D) f32,
    # emb_ref: (TQ, D) f32 (batch-invariant block).
    y = jnp.dot(xcol_ref[0], w_ref[...], preferred_element_type=jnp.float32)
    y = y * scale_ref[...] + shift_ref[...]            # folded BatchNorm (f32)
    y = jnp.maximum(y, 0.0)                            # ReLU
    o_ref[0] = (y + emb_ref[...]).astype(o_ref.dtype)  # + bev_embedding


def shared_conv_plus_embed(lss_feats, conv_w_col, bn_scale, bn_shift, embed_w, *, tq):
    """lss_feats: (bs, Cin, H, W) NCHW.  Returns bev_queries (bs, H*W, D) f32."""
    bs, cin, H, W = lss_feats.shape
    D = conv_w_col.shape[1]
    HW = H * W
    assert HW % tq == 0, "HW must be divisible by the query tile"
    kc_raw = 9 * cin
    Kc = _round_up(kc_raw, 128)                        # lane-aligned contraction dim

    # im2col glue (3x3, pad=1), channel-last, tap-major/channel-minor, bf16.
    # TODO(synk): replace JAX-side im2col with in-kernel halo'd 9-tap accumulation
    #             to remove the 9x HBM inflation; kept here for compile robustness
    #             (contraction dim 9*Cin stays MXU-dense after padding to 128).
    x = jnp.transpose(lss_feats, (0, 2, 3, 1)).astype(jnp.bfloat16)    # (bs, H, W, Cin)
    xp = jnp.pad(x, ((0, 0), (1, 1), (1, 1), (0, 0)))
    taps = [xp[:, kh:kh + H, kw:kw + W, :] for kh in range(3) for kw in range(3)]
    x_col = jnp.concatenate(taps, axis=-1).reshape(bs, HW, kc_raw)
    x_col = jnp.pad(x_col, ((0, 0), (0, 0), (0, Kc - kc_raw)))
    w = jnp.pad(conv_w_col, ((0, Kc - kc_raw), (0, 0))).astype(jnp.bfloat16)

    return pl.pallas_call(
        _conv_bn_relu_add_kernel,
        out_shape=jax.ShapeDtypeStruct((bs, HW, D), jnp.float32),
        grid_spec=pltpu.PrefetchScalarGridSpec(
            num_scalar_prefetch=0,
            grid=(bs, HW // tq),
            in_specs=[
                pl.BlockSpec((1, tq, Kc), lambda b, q: (b, q, 0)),
                pl.BlockSpec((Kc, D), lambda b, q: (0, 0)),        # constant weight
                pl.BlockSpec((1, D), lambda b, q: (0, 0)),
                pl.BlockSpec((1, D), lambda b, q: (0, 0)),
                pl.BlockSpec((tq, D), lambda b, q: (q, 0)),        # batch-invariant
            ],
            out_specs=pl.BlockSpec((1, tq, D), lambda b, q: (b, q, 0)),
        ),
        compiler_params=pltpu.CompilerParams(
            dimension_semantics=("parallel", "parallel")),
    )(x_col, w, bn_scale, bn_shift, embed_w)


# ---------------------------------------------------------------------------
# Kernel 2: hoisted K / V projection — single fused (D, 2D) matmul per kv-tile
# ---------------------------------------------------------------------------
def _kv_proj_kernel(kv_ref, wkv_ref, k_ref, v_ref):
    D = k_ref.shape[-1]
    y = jnp.dot(kv_ref[0], wkv_ref[...],
                preferred_element_type=jnp.float32)     # (TKV, 2D) f32
    k_ref[0] = y[:, :D].astype(jnp.bfloat16)            # lane-aligned static split
    v_ref[0] = y[:, D:].astype(jnp.bfloat16)


def kv_projection(kv_bf16, wkv, *, tkv):
    bs, L, D = kv_bf16.shape
    assert L % tkv == 0, "L must be divisible by the KV tile"
    return pl.pallas_call(
        _kv_proj_kernel,
        out_shape=(jax.ShapeDtypeStruct((bs, L, D), jnp.bfloat16),
                   jax.ShapeDtypeStruct((bs, L, D), jnp.bfloat16)),
        grid_spec=pltpu.PrefetchScalarGridSpec(
            num_scalar_prefetch=0,
            grid=(bs, L // tkv),
            in_specs=[
                pl.BlockSpec((1, tkv, D), lambda b, l: (b, l, 0)),
                pl.BlockSpec((D, 2 * D), lambda b, l: (0, 0)),
            ],
            out_specs=[
                pl.BlockSpec((1, tkv, D), lambda b, l: (b, l, 0)),
                pl.BlockSpec((1, tkv, D), lambda b, l: (b, l, 0)),
            ],
        ),
        compiler_params=pltpu.CompilerParams(
            dimension_semantics=("parallel", "parallel")),
    )(kv_bf16, wkv)


# ---------------------------------------------------------------------------
# Kernel 3: decoder layer (simplified) — flash-style online-softmax cross-attn
#           (query = bev_queries + bev_pos, key/value = projected camera feats)
#           + post-norm + FFN + norm, tiled over (batch, query-tile, kv-tile).
# TODO(synk): exact MSDeformableAttention (sampling offsets / reference points /
#             spatial_shapes / level_start_index) has no config here; replaced
#             by dense single-head cross-attention.
# ---------------------------------------------------------------------------
def _decoder_attn_ffn_kernel(q_ref, pos_ref, k_ref, v_ref, wq_ref, wo_ref, bo_ref,
                             g1_ref, b1_ref, w1_ref, bf1_ref, w2_ref, bf2_ref,
                             g2_ref, b2_ref, o_ref,
                             m_sc, l_sc, acc_sc, qp_sc):
    kv = pl.program_id(2)

    @pl.when(kv == 0)
    def _init():
        m_sc[...] = jnp.full(m_sc.shape, -jnp.inf, jnp.float32)
        l_sc[...] = jnp.zeros(l_sc.shape, jnp.float32)
        acc_sc[...] = jnp.zeros(acc_sc.shape, jnp.float32)
        # query projection (Wq already carries 1/sqrt(D)); computed once per
        # (batch, query-tile), cached bf16 for the whole KV sweep.
        q_in = (q_ref[0] + pos_ref[...]).astype(jnp.bfloat16)      # with_pos_embed
        qp_sc[...] = jnp.dot(q_in, wq_ref[...],
                             preferred_element_type=jnp.float32).astype(jnp.bfloat16)

    # --- online softmax over this KV tile (never materializes (nq, L)) ---
    k = k_ref[0]                                                    # (TKV, D) bf16
    v = v_ref[0]                                                    # (TKV, D) bf16
    s = jax.lax.dot_general(qp_sc[...], k, (((1,), (1,)), ((), ())),
                            preferred_element_type=jnp.float32)     # (TQ, TKV) f32
    m_prev = m_sc[...]
    m_new = jnp.maximum(m_prev, jnp.max(s, axis=-1, keepdims=True))
    alpha = jnp.exp(m_prev - m_new)
    p = jnp.exp(s - m_new)
    l_sc[...] = alpha * l_sc[...] + jnp.sum(p, axis=-1, keepdims=True)
    acc_sc[...] = alpha * acc_sc[...] + jnp.dot(p.astype(jnp.bfloat16), v,
                                                preferred_element_type=jnp.float32)
    m_sc[...] = m_new

    @pl.when(kv == pl.num_programs(2) - 1)
    def _finish():
        # deferred softmax normalization (EUP reciprocal, co-issues with MXU)
        ctx = acc_sc[...] * pl.reciprocal(l_sc[...], approx=True)   # (TQ, D) f32
        q_res = q_ref[0]                                            # f32 residual path
        x = q_res + jnp.dot(ctx.astype(jnp.bfloat16), wo_ref[...],
                            preferred_element_type=jnp.float32) + bo_ref[...]
        # LayerNorm 1 (f32)
        mu = jnp.mean(x, axis=-1, keepdims=True)
        var = jnp.mean((x - mu) ** 2, axis=-1, keepdims=True)
        x = (x - mu) * jax.lax.rsqrt(var + 1e-5) * g1_ref[...] + b1_ref[...]
        # FFN (Linear -> ReLU -> Linear) with residual
        h = jnp.maximum(jnp.dot(x.astype(jnp.bfloat16), w1_ref[...],
                                preferred_element_type=jnp.float32) + bf1_ref[...], 0.0)
        y = x + jnp.dot(h.astype(jnp.bfloat16), w2_ref[...],
                        preferred_element_type=jnp.float32) + bf2_ref[...]
        # LayerNorm 2 (f32)
        mu = jnp.mean(y, axis=-1, keepdims=True)
        var = jnp.mean((y - mu) ** 2, axis=-1, keepdims=True)
        y = (y - mu) * jax.lax.rsqrt(var + 1e-5) * g2_ref[...] + b2_ref[...]
        o_ref[0] = y.astype(o_ref.dtype)


def decoder_layer(bev_q, pos, k_all, v_all, p, *, tq, tkv):
    bs, nq, D = bev_q.shape
    L = k_all.shape[1]
    Dff = p["w1"].shape[1]
    assert nq % tq == 0 and L % tkv == 0
    sm_scale = 1.0 / math.sqrt(D)

    def const(shape):
        return pl.BlockSpec(shape, lambda b, q, kv: (0,) * len(shape))

    return pl.pallas_call(
        _decoder_attn_ffn_kernel,
        out_shape=jax.ShapeDtypeStruct((bs, nq, D), jnp.float32),
        grid_spec=pltpu.PrefetchScalarGridSpec(
            num_scalar_prefetch=0,
            grid=(bs, nq // tq, L // tkv),          # KV reduction axis last
            in_specs=[
                pl.BlockSpec((1, tq, D), lambda b, q, kv: (b, q, 0)),   # bev_q
                pl.BlockSpec((tq, D), lambda b, q, kv: (q, 0)),         # pos (shared)
                pl.BlockSpec((1, tkv, D), lambda b, q, kv: (b, kv, 0)), # K
                pl.BlockSpec((1, tkv, D), lambda b, q, kv: (b, kv, 0)), # V
                const((D, D)),                    # wq (pre-scaled by 1/sqrt(D))
                const((D, D)),                    # wo
                const((1, D)),                    # bo
                const((1, D)), const((1, D)),     # ln1 gamma/beta
                const((D, Dff)), const((1, Dff)),  # w1, bf1
                const((Dff, D)), const((1, D)),    # w2, bf2
                const((1, D)), const((1, D)),      # ln2 gamma/beta
            ],
            out_specs=pl.BlockSpec((1, tq, D), lambda b, q, kv: (b, q, 0)),
            scratch_shapes=[
                pltpu.VMEM((tq, 1), jnp.float32),    # running max m
                pltpu.VMEM((tq, 1), jnp.float32),    # running denom l
                pltpu.VMEM((tq, D), jnp.float32),    # unnormalized context acc
                pltpu.VMEM((tq, D), jnp.bfloat16),   # cached query projection
            ],
        ),
        compiler_params=pltpu.CompilerParams(
            dimension_semantics=("parallel", "parallel", "arbitrary")),
    )(bev_q, pos, k_all, v_all,
      (p["wq"] * sm_scale).astype(jnp.bfloat16),      # fold softmax scale into Wq
      p["wo"].astype(jnp.bfloat16), p["bo"],
      p["ln1_g"], p["ln1_b"],
      p["w1"].astype(jnp.bfloat16), p["bf1"],
      p["w2"].astype(jnp.bfloat16), p["bf2"],
      p["ln2_g"], p["ln2_b"])


# ---------------------------------------------------------------------------
# Forward pass (mirrors PerspectiveRefinement.forward)
# ---------------------------------------------------------------------------
def perspective_refinement_forward(mlvl_feats, lss_feats, params, *, tq=None, tkv=None):
    bs = mlvl_feats[0].shape[0]
    bev_h, bev_w = params["bev_shape"]
    D = params["embed_dims"]
    HW = bev_h * bev_w

    # --- flatten multi-level camera features (exact PyTorch semantics) ---
    feat_flatten = []
    spatial_shapes = []
    for feat in mlvl_feats:
        _, num_cam, c, h, w = feat.shape
        spatial_shapes.append((h, w))
        f = feat.reshape(bs, num_cam, c, h * w)           # flatten(3)
        f = jnp.transpose(f, (1, 0, 3, 2))                # permute(1,0,3,2)
        feat_flatten.append(f)
    feat_flatten = jnp.concatenate(feat_flatten, axis=2)  # (num_cam, bs, sum_hw, c)
    spatial_shapes_arr = jnp.asarray(spatial_shapes, dtype=jnp.int32)
    level_start_index = jnp.concatenate(
        [jnp.zeros((1,), jnp.int32),
         jnp.cumsum(jnp.prod(spatial_shapes_arr, axis=1))[:-1]])
    feat_flatten = jnp.transpose(feat_flatten, (0, 2, 1, 3))  # (num_cam, sum_hw, bs, c)
    # spatial_shapes_arr / level_start_index are only consumed by the deformable
    # attention inside the configurable decoder (see TODO above); unused here.
    del spatial_shapes_arr, level_start_index

    num_cam, sum_hw = feat_flatten.shape[0], feat_flatten.shape[1]
    L = num_cam * sum_hw

    tq = tq if tq is not None else _pick_tile(HW, cap=512)
    tkv = tkv if tkv is not None else _pick_tile(L, cap=512)

    # --- bev_queries = bev_embedding + shared_conv(lss_feats)   [Pallas] ---
    bev_q = shared_conv_plus_embed(lss_feats, params["conv_w_col"],
                                   params["bn_scale"], params["bn_shift"],
                                   params["embed_w"], tq=tq)          # (bs, HW, D) f32

    # --- learned positional encoding table, batch-invariant (HW, D) ---
    nf = D // 2
    pos = jnp.concatenate(
        [jnp.broadcast_to(params["col_embed"][None, :, :], (bev_h, bev_w, nf)),
         jnp.broadcast_to(params["row_embed"][:, None, :], (bev_h, bev_w, nf))],
        axis=-1).reshape(HW, D).astype(jnp.float32)

    # --- hoisted, fused K/V projection (bf16)   [Pallas] ---
    kv = jnp.transpose(feat_flatten, (2, 0, 1, 3)).reshape(bs, L, D)
    kv = kv.astype(jnp.bfloat16)
    wkv = jnp.concatenate([params["wk"], params["wv"]], axis=1).astype(jnp.bfloat16)
    k_all, v_all = kv_projection(kv, wkv, tkv=tkv)

    # --- decoder (simplified cross-attn + FFN layer)   [Pallas] ---
    bev_embed = decoder_layer(bev_q, pos, k_all, v_all, params, tq=tq, tkv=tkv)

    # return in query-first convention (num_query, bs, D)
    return jnp.transpose(bev_embed, (1, 0, 2))


# ---------------------------------------------------------------------------
# Deterministic parameter construction (shapes implied by __init__)
# ---------------------------------------------------------------------------
def init_params(key, bev_shape, in_channels, embed_dims, ffn_dims):
    bev_h, bev_w = bev_shape
    D = embed_dims
    ks = jax.random.split(key, 16)

    def xavier(k, shape):
        lim = math.sqrt(6.0 / (shape[-2] + shape[-1]))
        return jax.random.uniform(k, shape, jnp.float32, -lim, lim)

    # Conv2d weight (D, Cin, 3, 3) stored pre-reordered as (9*Cin, D):
    # row index = (kh*3+kw)*Cin + ci, matching the im2col tap/channel ordering.
    conv_w_col = xavier(ks[0], (9 * in_channels, D))
    # BatchNorm2d (eval mode) folded into scale/shift
    gamma = 1.0 + 0.1 * jax.random.normal(ks[1], (1, D), jnp.float32)
    beta = 0.1 * jax.random.normal(ks[2], (1, D), jnp.float32)
    r_mean = 0.1 * jax.random.normal(ks[3], (1, D), jnp.float32)
    r_var = jnp.abs(1.0 + 0.1 * jax.random.normal(ks[4], (1, D), jnp.float32))
    bn_scale = gamma * jax.lax.rsqrt(r_var + 1e-5)
    bn_shift = beta - r_mean * bn_scale

    return dict(
        bev_shape=bev_shape, embed_dims=D,
        conv_w_col=conv_w_col, bn_scale=bn_scale, bn_shift=bn_shift,
        embed_w=0.02 * jax.random.normal(ks[5], (bev_h * bev_w, D), jnp.float32),
        row_embed=0.02 * jax.random.normal(ks[6], (bev_h, D // 2), jnp.float32),
        col_embed=0.02 * jax.random.normal(ks[7], (bev_w, D // 2), jnp.float32),
        wq=xavier(ks[8], (D, D)), wk=xavier(ks[9], (D, D)),
        wv=xavier(ks[10], (D, D)), wo=xavier(ks[11], (D, D)),
        bo=jnp.zeros((1, D), jnp.float32),
        ln1_g=jnp.ones((1, D), jnp.float32), ln1_b=jnp.zeros((1, D), jnp.float32),
        w1=xavier(ks[12], (D, ffn_dims)), bf1=jnp.zeros((1, ffn_dims), jnp.float32),
        w2=xavier(ks[13], (ffn_dims, D)), bf2=jnp.zeros((1, D), jnp.float32),
        ln2_g=jnp.ones((1, D), jnp.float32), ln2_b=jnp.zeros((1, D), jnp.float32),
    )


if __name__ == "__main__":
    key = jax.random.PRNGKey(0)
    bs, num_cam = 2, 2
    in_channels, embed_dims, ffn_dims = 8, 128, 256   # D=128 -> lane-dense outputs
    bev_h = bev_w = 32                                # HW = 1024 -> TQ auto-picks 512
    k1, k2, k3, kp = jax.random.split(key, 4)

    # Two image-feature levels (bs, num_cam, C=embed_dims, h, w)
    # sum_hw = 16*16 + 8*8 = 320  ->  L = num_cam * sum_hw = 640 -> TKV auto-picks 320
    mlvl_feats = [
        jax.random.normal(k1, (bs, num_cam, embed_dims, 16, 16), jnp.float32),
        jax.random.normal(k2, (bs, num_cam, embed_dims, 8, 8), jnp.float32),
    ]
    # LSS BEV features, NCHW (bs, in_channels, bev_h, bev_w)
    lss_feats = jax.random.normal(k3, (bs, in_channels, bev_h, bev_w), jnp.float32)

    params = init_params(kp, (bev_h, bev_w), in_channels, embed_dims, ffn_dims)

    bev_embed = perspective_refinement_forward(mlvl_feats, lss_feats, params)
    bev_embed = jax.block_until_ready(bev_embed)
    assert bev_embed.shape == (bev_h * bev_w, bs, embed_dims)
    assert bool(jnp.all(jnp.isfinite(bev_embed)))
    print("KERNEL_OK")
</pallas_src>

<mosaic_0001>
module attributes {stable_mosaic.version = 11 : i64} {
  func.func @_conv_bn_relu_add_kernel(%arg0: i32, %arg1: i32, %arg2: memref<1x512x128xbf16, #tpu.memory_space<vmem>>, %arg3: memref<128x128xbf16, #tpu.memory_space<vmem>>, %arg4: memref<1x128xf32, #tpu.memory_space<vmem>>, %arg5: memref<1x128xf32, #tpu.memory_space<vmem>>, %arg6: memref<512x128xf32, #tpu.memory_space<vmem>>, %arg7: memref<1x512x128xf32, #tpu.memory_space<vmem>>) attributes {dimension_semantics = [#tpu.dimension_semantics<parallel>, #tpu.dimension_semantics<parallel>], iteration_bounds = array<i64: 2, 2>, scalar_prefetch = 0 : i64, scratch_operands = 0 : i64, tpu.core_type = #tpu.core_type<tc>, window_params = [{transform_indices = @transform_0, window_bounds = array<i64: 1, 512, 128>}, {pipeline_mode = #tpu.pipeline_mode<synchronous>, transform_indices = @transform_1, window_bounds = array<i64: 128, 128>}, {pipeline_mode = #tpu.pipeline_mode<synchronous>, transform_indices = @transform_2, window_bounds = array<i64: 1, 128>}, {pipeline_mode = #tpu.pipeline_mode<synchronous>, transform_indices = @transform_3, window_bounds = array<i64: 1, 128>}, {transform_indices = @transform_4, window_bounds = array<i64: 512, 128>}, {transform_indices = @transform_5, window_bounds = array<i64: 1, 512, 128>}]} {
    %c0 = arith.constant 0 : index
    %c0_0 = arith.constant 0 : index
    %c0_1 = arith.constant 0 : index
    %0 = vector.load %arg2[%c0, %c0_0, %c0_1] : memref<1x512x128xbf16, #tpu.memory_space<vmem>>, vector<1x512x128xbf16>
    %1 = vector.shape_cast %0 : vector<1x512x128xbf16> to vector<512x128xbf16>
    %c0_2 = arith.constant 0 : index
    %c0_3 = arith.constant 0 : index
    %2 = vector.load %arg3[%c0_2, %c0_3] : memref<128x128xbf16, #tpu.memory_space<vmem>>, vector<128x128xbf16>
    %cst = arith.constant dense<0.000000e+00> : vector<512x128xf32>
    %3 = tpu.matmul %1, %2, %cst {dimension_numbers = #tpu.dot_dimension_numbers<[1], [0], [0], [1], [0, 0, 1, 1], [], []>} : vector<512x128xbf16>, vector<128x128xbf16>, vector<512x128xf32> -> vector<512x128xf32>
    %c0_4 = arith.constant 0 : index
    %c0_5 = arith.constant 0 : index
    %4 = vector.load %arg4[%c0_4, %c0_5] : memref<1x128xf32, #tpu.memory_space<vmem>>, vector<1x128xf32>
    %5 = vector.broadcast %4 : vector<1x128xf32> to vector<512x128xf32>
    %6 = arith.mulf %3, %5 : vector<512x128xf32>
    %c0_6 = arith.constant 0 : index
    %c0_7 = arith.constant 0 : index
    %7 = vector.load %arg5[%c0_6, %c0_7] : memref<1x128xf32, #tpu.memory_space<vmem>>, vector<1x128xf32>
    %8 = vector.broadcast %7 : vector<1x128xf32> to vector<512x128xf32>
    %9 = arith.addf %6, %8 : vector<512x128xf32>
    %cst_8 = arith.constant 0.000000e+00 : f32
    %10 = vector.broadcast %cst_8 : f32 to vector<512x128xf32>
    %11 = arith.maximumf %9, %10 : vector<512x128xf32>
    %c0_9 = arith.constant 0 : index
    %c0_10 = arith.constant 0 : index
    %12 = vector.load %arg6[%c0_9, %c0_10] : memref<512x128xf32, #tpu.memory_space<vmem>>, vector<512x128xf32>
    %13 = arith.addf %11, %12 : vector<512x128xf32>
    %c0_11 = arith.constant 0 : index
    %c0_12 = arith.constant 0 : index
    %c0_13 = arith.constant 0 : index
    %14 = vector.load %arg7[%c0_11, %c0_12, %c0_13] : memref<1x512x128xf32, #tpu.memory_space<vmem>>, vector<1x512x128xf32>
    %15 = vector.shape_cast %14 : vector<1x512x128xf32> to vector<512x128xf32>
    %16 = vector.shape_cast %13 : vector<512x128xf32> to vector<1x512x128xf32>
    tpu.vector_store %arg7[%c0_11, %c0_12, %c0_13], %16 {strides = array<i32>} : memref<1x512x128xf32, #tpu.memory_space<vmem>>, vector<1x512x128xf32>,
    return
  }
  func.func @transform_0(%arg0: i32, %arg1: i32) -> (i32, i32, i32) {
    %c0_i32 = arith.constant 0 : i32
    %c0_i32_0 = arith.constant 0 : i32
    return %arg0, %arg1, %c0_i32 : i32, i32, i32
  }
  func.func @transform_1(%arg0: i32, %arg1: i32) -> (i32, i32) {
    %c0_i32 = arith.constant 0 : i32
    %c0_i32_0 = arith.constant 0 : i32
    %c0_i32_1 = arith.constant 0 : i32
    return %c0_i32, %c0_i32_0 : i32, i32
  }
  func.func @transform_2(%arg0: i32, %arg1: i32) -> (i32, i32) {
    %c0_i32 = arith.constant 0 : i32
    %c0_i32_0 = arith.constant 0 : i32
    %c0_i32_1 = arith.constant 0 : i32
    return %c0_i32, %c0_i32_0 : i32, i32
  }
  func.func @transform_3(%arg0: i32, %arg1: i32) -> (i32, i32) {
    %c0_i32 = arith.constant 0 : i32
    %c0_i32_0 = arith.constant 0 : i32
    %c0_i32_1 = arith.constant 0 : i32
    return %c0_i32, %c0_i32_0 : i32, i32
  }
  func.func @transform_4(%arg0: i32, %arg1: i32) -> (i32, i32) {
    %c0_i32 = arith.constant 0 : i32
    %c0_i32_0 = arith.constant 0 : i32
    return %arg1, %c0_i32 : i32, i32
  }
  func.func @transform_5(%arg0: i32, %arg1: i32) -> (i32, i32, i32) {
    %c0_i32 = arith.constant 0 : i32
    %c0_i32_0 = arith.constant 0 : i32
    return %arg0, %arg1, %c0_i32 : i32, i32, i32
  }
}

</mosaic_0001>

<bundles_post_ra>
// kernel: tpu_custom_call.1
= control target key start
LH: loop header
LB: loop body
LE: loop exit
PB: predicated region body
PF: predicated region fallthrough
CT: control target
= control target key end

     0   :  { %s2524_s0 = inlined_call_operand.hbm [shape: bf16[2,1024,128], index: 0, kind: input, shape index: {}]   ;;  %s2525_s1 = inlined_call_operand.hbm [shape: bf16[128,128], index: 1, kind: input, shape index: {}]   ;;  %s2526_s2 = inlined_call_operand.vmem [shape: f32[1,128], index: 2, kind: input, shape index: {}]   ;;  %s2527_s3 = inlined_call_operand.vmem [shape: f32[1,128], index: 3, kind: input, shape index: {}]   ;;  %s2528_s4 = inlined_call_operand.hbm [shape: f32[1024,128], index: 4, kind: input, shape index: {}]   ;;  %s2529_s5 = inlined_call_operand.hbm [shape: f32[2,1024,128], index: 5, kind: output, shape index: {}]  }
   0x1   :  { %2539 = sst [smem:[#allocation21_spill]] %s2524_s0 }
   0x2   :  { %2540 = sst [smem:[#allocation22_spill]] %s2525_s1 }
   0x3   :  { %2541 = sst [smem:[#allocation23_spill]] %s2529_s5 }
   0x4   :  { %10 = vsyncpa [#allocation3], 0 }
   0x5   :  { %12 = vsyncpa [#allocation3 + $0x1], 0 }
   0x6   :  { %13 = vsyncpa [#allocation6], 0 }
   0x7   :  { %14 = vsyncpa [#allocation4], 0 }
   0x8   :  { %16 = vsyncpa [#allocation4 + $0x1], 0  ;;  %s1974_s18 = smov 0   ;;  %s1976_s19 = smov 0  }
   0x9   :  { %s1978_s20 = smov 0   ;;  %s1980_s21 = smov 0  }
   0xa   :  { %s1982_s22 = smov 0   ;;  %s1984_s23 = smov 0  }
   0xb   :  { %s1986_s24 = smov 0   ;;  %s1988_s25 = smov 0  }
   0xc   :  { %s1990_s26 = smov 0   ;;  %s1992_s27 = smov 0  }
   0xd   :  { %s1994_s28 = smov 0  }
   0xe LB: > { %2542 = sst [smem:[#allocation13_spill]] %s1907_s21  ;;  %s1342_s29 = sadd.s32 4294967294, %s1935_s28   ;;  %s1935_s28 = sphi %s1994_s28, %s22_s28   ;;  %s1931_s27 = sphi %s1992_s27, %s2566_s27   ;;  %s1927_s26 = sphi %s1990_s26, %s2574_s26   ;;  %s1923_s25 = sphi %s1988_s25, %s2573_s25   ;;  %s1919_s24 = sphi %s1986_s24, %s2572_s24   ;;  %s1915_s23 = sphi %s1984_s23, %s2563_s23   ;;  %s1911_s22 = sphi %s1982_s22, %s2571_s22   ;;  %s1907_s21 = sphi %s1980_s21, %s2570_s21   ;;  %s1903_s20 = sphi %s1978_s20, %s2569_s20   ;;  %s1899_s19 = sphi %s1976_s19, %s2568_s19   ;;  %s1895_s18 = sphi %s1974_s18, %s2567_s18  }
   0xf   : > { %2543 = sst [smem:[#allocation14_spill]] %s1915_s23  ;;  %s31_s30 = sadd.s32 1, %s1927_s26 }
  0x10   : > { %2544 = sst [smem:[#allocation15_spill]] %s1931_s27  ;;  %p32_p0 = scmp.ge.s32.totalorder %s31_s30, 2 }
  0x11   : > { %s34_s6 = sadd.s32 1, %s1931_s27  ;;  %s43_s7 = sadd.s32 1, %s1915_s23 }
  0x12   : > { %p50_p1 = scmp.ne.s32.totalorder %s1915_s23, %s1911_s22  ;;  %s2576_s30 = smov (%p32_p0, %s31_s30), 0 }
  0x13   : > { %2545 = sst [smem:[#allocation16_spill]] %s2576_s30  ;;  %s2578_s6 = smov (!%p32_p0, %s34_s6), %s1931_s27 }
  0x14   : > { %s2040_s8 = ssub.s32 %s1927_s26, %s2576_s30  ;;  %p51_p2 = scmp.eq.s32.totalorder %s1935_s28, 0 }
  0x15   : > { %p36_p3 = scmp.ge.s32.totalorder %s2578_s6, 2  ;;  %p56_p4 = scmp.ne.s32.totalorder %s1911_s22, %s1907_s21 }
  0x16   : > { %p2050_p5 = por %p51_p2, %p50_p1  ;;  %p130_p6 = scmp.eq.s32.totalorder %s2040_s8, 0 }
  0x17   : > { %s2580_s6 = smov (%p36_p3, %s2578_s6), 0  ;;  %p177_p7 = scmp.eq.s32.totalorder %s1342_s29, 3 }
  0x18   : > { %2547 = sst [smem:[#allocation17_spill]] %s2580_s6  ;;  %s38_s10 = ssub.s32 %s1931_s27, %s2580_s6 }
  0x19   : > { %s40_s11 = sor.u32 %s2040_s8, %s38_s10  ;;  %p2063_p8 = por %p177_p7, %p56_p4 }
  0x1a   : > { %p41_p9 = scmp.eq.s32.totalorder %s40_s11, 0  ;;  %p1615_p10 = scmp.lt.s32.totalorder %s1935_s28, 4 }
  0x1b   : > { %s2548_s12 = scalar_select %p2063_p8, 1, 0 }
  0x1c   : > { %s217_s13 = sand.u32 1, %s1935_s28   ;;  %s219_s15 = sand.u32 1, %s1915_s23  }
  0x1d   : > { %2549 = sst [smem:[#allocation18_spill]] %s2548_s12  ;;  %s1346_s16 = sshll.u32 %s219_s15, 8 }
  0x1e   : > { %s2070_s14 = scalar_select %p41_p9, %s1915_s23, %s43_s7  }
  0x1f   : > { %s1347_s17 = sshll.u32 %s1927_s26, 6  ;;  %s1348_s30 = sshll.u32 %s1931_s27, 7 }
  0x20   : > { %2550 = sst [smem:[#allocation19_spill]] %s2070_s14  ;;  %s226_s29 = sadd.s32 %s1348_s30, %s1347_s17 }
  0x21   : > { %s221_s10 = scalar_lea.vmem [#allocation2], %s1346_s16  ;;  %s1349_s5 = sshll.u32 %s226_s29, 2 }
  0x22   : > { %s231_s6 = sshll.u32 %s221_s10, 4  ;;  %s2551_s0 = sld [smem:[#allocation21_spill]]  ;;  %s232_s6 = int_to_ptr.vmem [resolvable:$true] %s231_s6 }
  0x23   : > { %p1604_p11 = pnand %p1615_p10, %p2050_p5  ;;  %s2082_s30 = scalar_lea.sflag [#allocation3], %s217_s13 }
  0x24   : > { %s1937_s16 = smov 64   ;;  %s1938_s17 = smov 4  }
  0x25   : > { %s2086_s29 = sadd.s32 4294967295, %s1935_s28   ;;  %p145_p13 = scmp.ne.s32.totalorder %s1899_s19, %s1895_s18 }
  0x26   : > { %p57_p12 = scmp.eq.s32.totalorder %s2086_s29, 0  ;;  %p171_p0 = scmp.eq.s32.totalorder %s2086_s29, 3 }
  0x27   : > { %p1343_p3 = scmp.ge.s32.totalorder %s1935_s28, 1  ;;  %s2556_s1 = sld [smem:[#allocation22_spill]] }
  0x28   : > { %s228_s7 = scalar_lea.hbm %s2551_s0, %s1349_s5  ;;  %p2098_p5 = por %p57_p12, %p56_p4 }
  0x29   : > { %s229_s15 = sshll.u32 %s228_s7, 4  ;;  %p2104_p7 = por %p145_p13, %p57_p12  ;;  %s230_s15 = int_to_ptr.hbm [resolvable:$true] %s229_s15 }
  0x2a   : > { %1606 = dma.hbm_to_vmem [thread:$0]  (!%p1604_p11), %s230_s15, 4096, %s232_s6, %s2082_s30, %s1937_s16, %s1937_s16, %s1938_s17  }
  0x2b   : > { %p2111_p9 = por %p171_p0, %p50_p1  ;;  %p184_p11 = scmp.lt.s32.totalorder %s1935_s28, 5 }
  0x2c   : > { %s1939_s11 = smov [#allocation5]   ;;  %s132_s15 = sadd.s32 1, %s1903_s20 }
  0x2d   : > { %s2554_s18 = scalar_select %p2111_p9, 1, 0 }
  0x2e   : > { %s195_s13 = sshll.u32 %s2556_s1, 4  ;;  %p2119_p4 = pnand %p1343_p3, %p184_p11  ;;  %s196_s13 = int_to_ptr.hbm [resolvable:$true] %s195_s13 }
  0x2f   : > { %2555 = sst [smem:[#allocation20_spill]] %s2554_s18  ;;  %s197_s7 = sshll.u32 %s1939_s11, 4  ;;  %s198_s7 = int_to_ptr.vmem [resolvable:$true] %s197_s7 }
  0x30   : > { %p1599_p13 = pneg %p2119_p4  ;;  %p139_p0 = scmp.ne.s32.totalorder %s1903_s20, %s1899_s19 }
  0x31   : > { %s2131_s0 = scalar_select %p130_p6, %s1903_s20, %s132_s15  }
  0x32   : > { %p1600_p1 = pnand %p1599_p13, %p57_p12  ;;  %p141_p3 = por %p139_p0, %p51_p2 }
  0x33   : > { %s243_s9 = sand.u32 1, %s1903_s20   ;;  %s1524_s1 = sshll.u32 %s1927_s26, 9 }
  0x34   : > { %1602 = dma.hbm_to_vmem [thread:$0]  (!%p1600_p1), %s196_s13, 1024, %s198_s7, [#allocation6], %s1937_s16, %s1937_s16, %s1938_s17  }
  0x35   : > { %s1350_s12 = sshll.u32 %s243_s9, 9  ;;  %s250_s11 = scalar_lea.hbm %s2528_s4, %s1524_s1 }
  0x36   : > { %s251_s23 = sshll.u32 %s250_s11, 4  ;;  %s245_s21 = scalar_lea.vmem [#allocation7], %s1350_s12  ;;  %s252_s23 = int_to_ptr.hbm [resolvable:$true] %s251_s23 }
  0x37   : > { %s253_s18 = sshll.u32 %s245_s21, 4  ;;  %p1607_p6 = pnand %p1615_p10, %p141_p3  ;;  %s254_s18 = int_to_ptr.vmem [resolvable:$true] %s253_s18 }
  0x38   : > { %s1940_s8 = smov 128   ;;  %s1941_s15 = smov 8  }
  0x39   : > { %1609 = dma.hbm_to_vmem [thread:$0]  (!%p1607_p6), %s252_s23, 8192, %s254_s18, %s2082_s30, %s1940_s8, %s1940_s8, %s1941_s15  }
  0x3a   : > { %265 = sbr.rel (%p2119_p4) target bundleno = 368 (0x170), region = 40  ;;  %s267_s16 = sand.u32 (!%p2119_p4), 1, %s2086_s29  }
  0x3b   : > { %s2149_s17 = sand.u32 (!%p2119_p4), 1, %s1911_s22   ;;  %s268_s27 = scalar_lea.sflag (!%p2119_p4), [#allocation3], %s267_s16 }
  0x3c   : > { %s1354_s1 = sshll.u32 (!%p2119_p4), %s2149_s17, 8 }
  0x3d   : > { %s2152_s21 = scalar_lea.vmem (!%p2119_p4), [#allocation2], %s1354_s1 }
  0x3f   : > { %1878 = dma.done.wait (%p2098_p5), %s268_s27, 4096  }
  0x40   : > { %1880 = vsyncadd (%p2098_p5), %s268_s27, 4294963200 }
  0x41   : > { %1882 = dma.done.wait (%p57_p12), [#allocation6], 1024  }
  0x42   : > { %1884 = vsyncadd (%p57_p12), [#allocation6], 4294966272  ;;  %s284_s23 = sand.u32 1, %s1899_s19  }
  0x43   : > { %s1356_s14 = sshll.u32 %s284_s23, 9 }
  0x44   : > { %s2163_s30 = scalar_lea.vmem [#allocation7], %s1356_s14 }
  0x45   : > { %1886 = dma.done.wait (%p2104_p7), %s268_s27, 8192  }
  0x46   : > { %1888 = vsyncadd (%p2104_p7), %s268_s27, 4294959104  ;;  %v1564_v0 = vld [vmem:[#allocation5 + $0x38] sm:$0xff]  ;;  %v1563_v1 = vld [vmem:[#allocation5 + $0x30] sm:$0xff]  ;;  %s1357_s13 = sshll.u32 %s2149_s17, 9  ;;  %s1519_s7 = sshll.u32 %s1919_s24, 6 }
  0x47   : > { %642 = vmatpush.bf16.msra.mxu0 %v1564_v0  ;;  %1565 = vmatpush.bf16.msra.mxu1 %v1564_v0  ;;  %v1562_v2 = vld [vmem:[#allocation5 + $0x28] sm:$0xff]  ;;  %v1561_v3 = vld [vmem:[#allocation5 + $0x20] sm:$0xff]  ;;  %v1560_v4 = vld [vmem:[#allocation5 + $0x18] sm:$0xff]  ;;  %s2220_s10 = scalar_lea.vmem [#allocation8], %s1357_s13  ;;  %s1520_s9 = sshll.u32 %s1923_s25, 7 }
  0x48   : > { %1566 = vmatpush.bf16.msra.mxu2 %v1564_v0  ;;  %1567 = vmatpush.bf16.msra.mxu3 %v1564_v0  ;;  %v1559_v5 = vld [vmem:[#allocation5 + $0x10] sm:$0xff]  ;;  %v1558_v6 = vld [vmem:[#allocation5 + $0x8] sm:$0xff]  ;;  %v1557_v7 = vld [vmem:[#allocation5] sm:$0xff]  ;;  %s1215_s24 = sadd.s32 %s1520_s9, %s1519_s7  ;;  %s2558_s8 = sld [smem:[#allocation23_spill]] }
  0x49   : > { %v1525_v8 = vld [vmem:[%s2152_s21] sm:$0xff]  ;;  %v1526_v12 = vld [vmem:[%s2152_s21 + $0x8] sm:$0xff]  ;;  %v1527_v16 = vld [vmem:[%s2152_s21 + $0x10] sm:$0xff]  ;;  %s1521_s25 = sshll.u32 %s1215_s24, 3  ;;  %s1218_s1 = sshll.u32 %s2220_s10, 4  ;;  %s1219_s1 = int_to_ptr.vmem [resolvable:$true] %s1218_s1 }
  0x4a   : > { %v1533_v9 = vld [vmem:[%s2152_s21 + $0x40] sm:$0xff]  ;;  %v1534_v13 = vld [vmem:[%s2152_s21 + $0x48] sm:$0xff]  ;;  %v1535_v17 = vld [vmem:[%s2152_s21 + $0x50] sm:$0xff] }
  0x4b   : > { %643 = vmatpush.bf16.msra.mxu0 %v1563_v1  ;;  %1568 = vmatpush.bf16.msra.mxu1 %v1563_v1  ;;  %v1541_v10 = vld [vmem:[%s2152_s21 + $0x80] sm:$0xff]  ;;  %v1542_v14 = vld [vmem:[%s2152_s21 + $0x88] sm:$0xff]  ;;  %v1543_v18 = vld [vmem:[%s2152_s21 + $0x90] sm:$0xff] }
  0x4c   : > { %1569 = vmatpush.bf16.msra.mxu2 %v1563_v1  ;;  %1570 = vmatpush.bf16.msra.mxu3 %v1563_v1  ;;  %v1549_v11 = vld [vmem:[%s2152_s21 + $0xc0] sm:$0xff]  ;;  %v1550_v15 = vld [vmem:[%s2152_s21 + $0xc8] sm:$0xff]  ;;  %v1551_v19 = vld [vmem:[%s2152_s21 + $0xd0] sm:$0xff] }
  0x4d   : > { %v1528_v20 = vld [vmem:[%s2152_s21 + $0x18] sm:$0xff]  ;;  %v1529_v24 = vld [vmem:[%s2152_s21 + $0x20] sm:$0xff]  ;;  %v1530_v28 = vld [vmem:[%s2152_s21 + $0x28] sm:$0xff] }
  0x4e   : > { %v1536_v21 = vld [vmem:[%s2152_s21 + $0x58] sm:$0xff]  ;;  %v1537_v25 = vld [vmem:[%s2152_s21 + $0x60] sm:$0xff]  ;;  %v1538_v29 = vld [vmem:[%s2152_s21 + $0x68] sm:$0xff]  ;;  %s1217_s15 = scalar_lea.hbm %s2558_s8, %s1521_s25  ;;  %s1825_s5 = scalar_lea.hbm %s2558_s8, 2048 }
  0x4f   : > { %644 = vmatpush.bf16.msra.mxu0 %v1562_v2  ;;  %1571 = vmatpush.bf16.msra.mxu1 %v1562_v2  ;;  %v1544_v22 = vld [vmem:[%s2152_s21 + $0x98] sm:$0xff]  ;;  %v1545_v26 = vld [vmem:[%s2152_s21 + $0xa0] sm:$0xff]  ;;  %v1546_v30 = vld [vmem:[%s2152_s21 + $0xa8] sm:$0xff]  ;;  %s1220_s27 = sshll.u32 %s1217_s15, 4  ;;  %s1221_s27 = int_to_ptr.hbm [resolvable:$true] %s1220_s27 }
  0x50   : > { %1572 = vmatpush.bf16.msra.mxu2 %v1562_v2  ;;  %1573 = vmatpush.bf16.msra.mxu3 %v1562_v2  ;;  %v1552_v23 = vld [vmem:[%s2152_s21 + $0xd8] sm:$0xff]  ;;  %v1553_v27 = vld [vmem:[%s2152_s21 + $0xe0] sm:$0xff]  ;;  %v1554_v31 = vld [vmem:[%s2152_s21 + $0xe8] sm:$0xff]  ;;  %s1819_s23 = sshra.s32 %s1221_s27, 4  ;;  %s1820_s23 = int_to_ptr.hbm [resolvable:$true] %s1819_s23 }
  0x51   : > { %v1531_v32 = vld [vmem:[%s2152_s21 + $0x30] sm:$0xff]  ;;  %v1532_v36 = vld [vmem:[%s2152_s21 + $0x38] sm:$0xff]  ;;  %v2204_v40 = vld [vmem:[%s2526_s2] ss:$0 sm:$0xff]  ;;  %s1821_s14 = scalar_lea.hbm %s1820_s23, 512  ;;  %p1826_p5 = scmp.lt.s32.totalorder %s1820_s23, %s2558_s8 }
  0x52   : > { %v1539_v33 = vld [vmem:[%s2152_s21 + $0x70] sm:$0xff]  ;;  %v1540_v37 = vld [vmem:[%s2152_s21 + $0x78] sm:$0xff]  ;;  %v2209_v41 = vld [vmem:[%s2527_s3] ss:$0 sm:$0xff]  ;;  %p1822_p2 = scmp.ne.s32.totalorder %s1820_s23, %s1821_s14  ;;  %p1827_p7 = scmp.lt.s32.totalorder %s1825_s5, %s1821_s14 }
  0x53   : > { %645 = vmatpush.bf16.msra.mxu0 %v1561_v3  ;;  %1574 = vmatpush.bf16.msra.mxu1 %v1561_v3  ;;  %v1547_v34 = vld [vmem:[%s2152_s21 + $0xb0] sm:$0xff]  ;;  %v1548_v38 = vld [vmem:[%s2152_s21 + $0xb8] sm:$0xff]  ;;  %v1011_v48 = vld [vmem:[%s2163_s30] sm:$0xff] }
  0x54   : > { %1575 = vmatpush.bf16.msra.mxu2 %v1561_v3  ;;  %1576 = vmatpush.bf16.msra.mxu3 %v1561_v3  ;;  %v1555_v35 = vld [vmem:[%s2152_s21 + $0xf0] sm:$0xff]  ;;  %v1556_v39 = vld [vmem:[%s2152_s21 + $0xf8] sm:$0xff]  ;;  %v1027_v49 = vld [vmem:[%s2163_s30 + $0x80] sm:$0xff]  ;;  %s1204_s21 = scalar_lea.sflag [#allocation4], %s2149_s17  ;;  %p1823_p10 = pnand %p1822_p2, %p2111_p9 }
  0x55   : > { %v1043_v0 = vld [vmem:[%s2163_s30 + $0x100] sm:$0xff]  ;;  %p1828_p11 = por %p1827_p7, %p1826_p5 }
  0x56   : > { %v1059_v1 = vld [vmem:[%s2163_s30 + $0x180] sm:$0xff]  ;;  %p1824_p12 = pneg %p1823_p10 }
  0x57   : > { %646 = vmatpush.bf16.msra.mxu0 %v1560_v4  ;;  %1577 = vmatpush.bf16.msra.mxu1 %v1560_v4 }
  0x58   : > { %1578 = vmatpush.bf16.msra.mxu2 %v1560_v4  ;;  %1579 = vmatpush.bf16.msra.mxu3 %v1560_v4  ;;  %p1829_p4 = pnand %p1828_p11, %p1824_p12 }
  0x5b   : > { %647 = vmatpush.bf16.msra.mxu0 %v1559_v5  ;;  %1580 = vmatpush.bf16.msra.mxu1 %v1559_v5 }
  0x5c   : > { %1581 = vmatpush.bf16.msra.mxu2 %v1559_v5  ;;  %1582 = vmatpush.bf16.msra.mxu3 %v1559_v5 }
  0x5f   : > { %648 = vmatpush.bf16.msra.mxu0 %v1558_v6  ;;  %1583 = vmatpush.bf16.msra.mxu1 %v1558_v6 }
  0x60   : > { %1584 = vmatpush.bf16.msra.mxu2 %v1558_v6  ;;  %1585 = vmatpush.bf16.msra.mxu3 %v1558_v6  ;;  %v1012_v6 = vld [vmem:[%s2163_s30 + $0x8] sm:$0xff] }
  0x63   : > { %649 = vmatpush.bf16.msra.mxu0 %v1557_v7  ;;  %1586 = vmatpush.bf16.msra.mxu1 %v1557_v7 }
  0x64   : > { %1587 = vmatpush.bf16.msra.mxu2 %v1557_v7  ;;  %1588 = vmatpush.bf16.msra.mxu3 %v1557_v7  ;;  %v1028_v7 = vld [vmem:[%s2163_s30 + $0x88] sm:$0xff] }
  0x66   : > { %650 = vmatmul.bf16.vlgmr.msra.gmra.mxu0 %v1525_v8  ;;  %690 = vmatmul.bf16.vlgmr.msra.gmra.mxu1 %v1533_v9 }
  0x67   : > { %730 = vmatmul.bf16.vlgmr.msra.gmra.mxu2 %v1541_v10  ;;  %770 = vmatmul.bf16.vlgmr.msra.gmra.mxu3 %v1549_v11 }
  0x76   : > { %655 = vmatmul.bf16.gmra.mxu0 %v1526_v12  ;;  %695 = vmatmul.bf16.gmra.mxu1 %v1534_v13 }
  0x77   : > { %735 = vmatmul.bf16.gmra.mxu2 %v1542_v14  ;;  %775 = vmatmul.bf16.gmra.mxu3 %v1550_v15 }
  0x86   : > { %660 = vmatmul.bf16.gmra.mxu0 %v1527_v16  ;;  %700 = vmatmul.bf16.gmra.mxu1 %v1535_v17 }
  0x87   : > { %740 = vmatmul.bf16.gmra.mxu2 %v1543_v18  ;;  %780 = vmatmul.bf16.gmra.mxu3 %v1551_v19 }
  0x96   : > { %665 = vmatmul.bf16.gmra.mxu0 %v1528_v20  ;;  %705 = vmatmul.bf16.gmra.mxu1 %v1536_v21 }
  0x97   : > { %745 = vmatmul.bf16.gmra.mxu2 %v1544_v22  ;;  %785 = vmatmul.bf16.gmra.mxu3 %v1552_v23 }
  0xa6   : > { %670 = vmatmul.bf16.gmra.mxu0 %v1529_v24  ;;  %710 = vmatmul.bf16.gmra.mxu1 %v1537_v25  ;;  %v1044_v24 = vld [vmem:[%s2163_s30 + $0x108] sm:$0xff] }
  0xa7   : > { %750 = vmatmul.bf16.gmra.mxu2 %v1545_v26  ;;  %790 = vmatmul.bf16.gmra.mxu3 %v1553_v27  ;;  %v1060_v25 = vld [vmem:[%s2163_s30 + $0x188] sm:$0xff] }
  0xb6   : > { %675 = vmatmul.bf16.gmra.mxu0 %v1530_v28  ;;  %715 = vmatmul.bf16.gmra.mxu1 %v1538_v29 }
  0xb7   : > { %755 = vmatmul.bf16.gmra.mxu2 %v1546_v30  ;;  %795 = vmatmul.bf16.gmra.mxu3 %v1554_v31  ;;  %v1013_v30 = vld [vmem:[%s2163_s30 + $0x10] sm:$0xff] }
  0xb8   : > { %v1029_v31 = vld [vmem:[%s2163_s30 + $0x90] sm:$0xff] }
  0xc6   : > { %680 = vmatmul.bf16.gmra.mxu0 %v1531_v32  ;;  %720 = vmatmul.bf16.gmra.mxu1 %v1539_v33 }
  0xc7   : > { %760 = vmatmul.bf16.gmra.mxu2 %v1547_v34  ;;  %800 = vmatmul.bf16.gmra.mxu3 %v1555_v35 }
  0xd6   : > { %685 = vmatmul.bf16.gmra.mxu0 %v1532_v36  ;;  %725 = vmatmul.bf16.gmra.mxu1 %v1540_v37 }
  0xd7   : > { %765 = vmatmul.bf16.gmra.mxu2 %v1548_v38  ;;  %805 = vmatmul.bf16.gmra.mxu3 %v1556_v39 }
  0xe3   : > { %v651_v42 = vpop.f32.mrf.mxu0  ;;  %v691_v43 = vpop.f32.mrf.mxu1 }
  0xe4   : > { %v815_v44 = vmul.f32 %v2204_v40, %v651_v42  ;;  %v831_v45 = vmul.f32 %v2204_v40, %v691_v43 }
  0xe6   : > { %v883_v46 = vadd.f32 %v2209_v41, %v815_v44  ;;  %v899_v47 = vadd.f32 %v2209_v41, %v831_v45 }
  0xe8   : > { %v947_v50 = vmax.f32 %v883_v46, 0.0  ;;  %v963_v51 = vmax.f32 %v899_v47, 0.0 }
  0xea   : > { %v1075_v52 = vadd.f32 %v1011_v48, %v947_v50  ;;  %v1091_v53 = vadd.f32 %v1027_v49, %v963_v51  ;;  %v731_v54 = vpop.f32.mrf.mxu2  ;;  %v771_v55 = vpop.f32.mrf.mxu3  ;;  %v1045_v50 = vld [vmem:[%s2163_s30 + $0x110] sm:$0xff] }
  0xeb   : > { %v847_v56 = vmul.f32 %v2204_v40, %v731_v54  ;;  %v863_v57 = vmul.f32 %v2204_v40, %v771_v55  ;;  %v653_v58 = vpop.f32.mrf.mxu0  ;;  %v693_v59 = vpop.f32.mrf.mxu1  ;;  %v1061_v51 = vld [vmem:[%s2163_s30 + $0x190] sm:$0xff] }
  0xec   : > { %1139 = vst [vmem:[%s2220_s10] sm:$0xff] %v1075_v52  ;;  %v816_v60 = vmul.f32 %v2204_v40, %v653_v58  ;;  %v832_v61 = vmul.f32 %v2204_v40, %v693_v59 }
  0xed   : > { %1155 = vst [vmem:[%s2220_s10 + $0x80] sm:$0xff] %v1091_v53  ;;  %v915_v62 = vadd.f32 %v2209_v41, %v847_v56  ;;  %v931_v63 = vadd.f32 %v2209_v41, %v863_v57  ;;  %v1014_v56 = vld [vmem:[%s2163_s30 + $0x18] sm:$0xff] }
  0xee   : > { %v884_v2 = vadd.f32 %v2209_v41, %v816_v60  ;;  %v900_v3 = vadd.f32 %v2209_v41, %v832_v61  ;;  %v1030_v57 = vld [vmem:[%s2163_s30 + $0x98] sm:$0xff] }
  0xef   : > { %v979_v4 = vmax.f32 %v915_v62, 0.0  ;;  %v995_v5 = vmax.f32 %v931_v63, 0.0 }
  0xf0   : > { %v948_v8 = vmax.f32 %v884_v2, 0.0  ;;  %v964_v9 = vmax.f32 %v900_v3, 0.0 }
  0xf1   : > { %v1107_v10 = vadd.f32 %v1043_v0, %v979_v4  ;;  %v1123_v11 = vadd.f32 %v1059_v1, %v995_v5 }
  0xf2   : > { %v1076_v12 = vadd.f32 %v1012_v6, %v948_v8  ;;  %v1092_v13 = vadd.f32 %v1028_v7, %v964_v9  ;;  %v733_v14 = vpop.f32.mrf.mxu2  ;;  %v773_v15 = vpop.f32.mrf.mxu3 }
  0xf3   : > { %1171 = vst [vmem:[%s2220_s10 + $0x100] sm:$0xff] %v1107_v10  ;;  %v848_v16 = vmul.f32 %v2204_v40, %v733_v14  ;;  %v864_v17 = vmul.f32 %v2204_v40, %v773_v15  ;;  %v656_v18 = vpop.f32.mrf.mxu0  ;;  %v696_v19 = vpop.f32.mrf.mxu1  ;;  %v1046_v10 = vld [vmem:[%s2163_s30 + $0x118] sm:$0xff] }
  0xf4   : > { %1187 = vst [vmem:[%s2220_s10 + $0x180] sm:$0xff] %v1123_v11  ;;  %v817_v20 = vmul.f32 %v2204_v40, %v656_v18  ;;  %v833_v21 = vmul.f32 %v2204_v40, %v696_v19  ;;  %v1062_v11 = vld [vmem:[%s2163_s30 + $0x198] sm:$0xff] }
  0xf5   : > { %1140 = vst [vmem:[%s2220_s10 + $0x8] sm:$0xff] %v1076_v12  ;;  %v916_v22 = vadd.f32 %v2209_v41, %v848_v16  ;;  %v932_v23 = vadd.f32 %v2209_v41, %v864_v17  ;;  %v1015_v16 = vld [vmem:[%s2163_s30 + $0x20] sm:$0xff] }
  0xf6   : > { %1156 = vst [vmem:[%s2220_s10 + $0x88] sm:$0xff] %v1092_v13  ;;  %v885_v26 = vadd.f32 %v2209_v41, %v817_v20  ;;  %v901_v27 = vadd.f32 %v2209_v41, %v833_v21  ;;  %v1031_v17 = vld [vmem:[%s2163_s30 + $0xa0] sm:$0xff] }
  0xf7   : > { %v980_v28 = vmax.f32 %v916_v22, 0.0  ;;  %v996_v29 = vmax.f32 %v932_v23, 0.0 }
  0xf8   : > { %v949_v32 = vmax.f32 %v885_v26, 0.0  ;;  %v965_v33 = vmax.f32 %v901_v27, 0.0 }
  0xf9   : > { %v1108_v34 = vadd.f32 %v1044_v24, %v980_v28  ;;  %v1124_v35 = vadd.f32 %v1060_v25, %v996_v29 }
  0xfa   : > { %v1077_v36 = vadd.f32 %v1013_v30, %v949_v32  ;;  %v1093_v37 = vadd.f32 %v1029_v31, %v965_v33  ;;  %v736_v38 = vpop.f32.mrf.mxu2  ;;  %v776_v39 = vpop.f32.mrf.mxu3 }
  0xfb   : > { %1172 = vst [vmem:[%s2220_s10 + $0x108] sm:$0xff] %v1108_v34  ;;  %v849_v42 = vmul.f32 %v2204_v40, %v736_v38  ;;  %v865_v43 = vmul.f32 %v2204_v40, %v776_v39  ;;  %v658_v44 = vpop.f32.mrf.mxu0  ;;  %v698_v45 = vpop.f32.mrf.mxu1  ;;  %v1047_v34 = vld [vmem:[%s2163_s30 + $0x120] sm:$0xff] }
  0xfc   : > { %1188 = vst [vmem:[%s2220_s10 + $0x188] sm:$0xff] %v1124_v35  ;;  %v818_v46 = vmul.f32 %v2204_v40, %v658_v44  ;;  %v834_v47 = vmul.f32 %v2204_v40, %v698_v45  ;;  %v1063_v35 = vld [vmem:[%s2163_s30 + $0x1a0] sm:$0xff] }
  0xfd   : > { %1141 = vst [vmem:[%s2220_s10 + $0x10] sm:$0xff] %v1077_v36  ;;  %v917_v48 = vadd.f32 %v2209_v41, %v849_v42  ;;  %v933_v49 = vadd.f32 %v2209_v41, %v865_v43  ;;  %v1016_v42 = vld [vmem:[%s2163_s30 + $0x28] sm:$0xff] }
  0xfe   : > { %1157 = vst [vmem:[%s2220_s10 + $0x90] sm:$0xff] %v1093_v37  ;;  %v886_v52 = vadd.f32 %v2209_v41, %v818_v46  ;;  %v902_v53 = vadd.f32 %v2209_v41, %v834_v47  ;;  %v1032_v43 = vld [vmem:[%s2163_s30 + $0xa8] sm:$0xff] }
  0xff   : > { %v981_v54 = vmax.f32 %v917_v48, 0.0  ;;  %v997_v55 = vmax.f32 %v933_v49, 0.0 }
 0x100   : > { %v950_v58 = vmax.f32 %v886_v52, 0.0  ;;  %v966_v59 = vmax.f32 %v902_v53, 0.0 }
 0x101   : > { %v1109_v60 = vadd.f32 %v1045_v50, %v981_v54  ;;  %v1125_v61 = vadd.f32 %v1061_v51, %v997_v55 }
 0x102   : > { %v1078_v62 = vadd.f32 %v1014_v56, %v950_v58  ;;  %v1094_v63 = vadd.f32 %v1030_v57, %v966_v59  ;;  %v738_v0 = vpop.f32.mrf.mxu2  ;;  %v778_v1 = vpop.f32.mrf.mxu3 }
 0x103   : > { %1173 = vst [vmem:[%s2220_s10 + $0x110] sm:$0xff] %v1109_v60  ;;  %v850_v2 = vmul.f32 %v2204_v40, %v738_v0  ;;  %v866_v3 = vmul.f32 %v2204_v40, %v778_v1  ;;  %v661_v4 = vpop.f32.mrf.mxu0  ;;  %v701_v5 = vpop.f32.mrf.mxu1  ;;  %v1048_v60 = vld [vmem:[%s2163_s30 + $0x128] sm:$0xff] }
 0x104   : > { %1189 = vst [vmem:[%s2220_s10 + $0x190] sm:$0xff] %v1125_v61  ;;  %v819_v6 = vmul.f32 %v2204_v40, %v661_v4  ;;  %v835_v7 = vmul.f32 %v2204_v40, %v701_v5  ;;  %v1064_v61 = vld [vmem:[%s2163_s30 + $0x1a8] sm:$0xff] }
 0x105   : > { %1142 = vst [vmem:[%s2220_s10 + $0x18] sm:$0xff] %v1078_v62  ;;  %v918_v8 = vadd.f32 %v2209_v41, %v850_v2  ;;  %v934_v9 = vadd.f32 %v2209_v41, %v866_v3  ;;  %v1017_v2 = vld [vmem:[%s2163_s30 + $0x30] sm:$0xff] }
 0x106   : > { %1158 = vst [vmem:[%s2220_s10 + $0x98] sm:$0xff] %v1094_v63  ;;  %v887_v12 = vadd.f32 %v2209_v41, %v819_v6  ;;  %v903_v13 = vadd.f32 %v2209_v41, %v835_v7  ;;  %v1033_v3 = vld [vmem:[%s2163_s30 + $0xb0] sm:$0xff] }
 0x107   : > { %v982_v14 = vmax.f32 %v918_v8, 0.0  ;;  %v998_v15 = vmax.f32 %v934_v9, 0.0 }
 0x108   : > { %v951_v18 = vmax.f32 %v887_v12, 0.0  ;;  %v967_v19 = vmax.f32 %v903_v13, 0.0 }
 0x109   : > { %v1110_v20 = vadd.f32 %v1046_v10, %v982_v14  ;;  %v1126_v21 = vadd.f32 %v1062_v11, %v998_v15 }
 0x10a   : > { %v1079_v22 = vadd.f32 %v1015_v16, %v951_v18  ;;  %v1095_v23 = vadd.f32 %v1031_v17, %v967_v19  ;;  %v741_v24 = vpop.f32.mrf.mxu2  ;;  %v781_v25 = vpop.f32.mrf.mxu3 }
 0x10b   : > { %1174 = vst [vmem:[%s2220_s10 + $0x118] sm:$0xff] %v1110_v20  ;;  %v851_v26 = vmul.f32 %v2204_v40, %v741_v24  ;;  %v867_v27 = vmul.f32 %v2204_v40, %v781_v25  ;;  %v663_v28 = vpop.f32.mrf.mxu0  ;;  %v703_v29 = vpop.f32.mrf.mxu1  ;;  %v1049_v20 = vld [vmem:[%s2163_s30 + $0x130] sm:$0xff] }
 0x10c   : > { %1190 = vst [vmem:[%s2220_s10 + $0x198] sm:$0xff] %v1126_v21  ;;  %v820_v30 = vmul.f32 %v2204_v40, %v663_v28  ;;  %v836_v31 = vmul.f32 %v2204_v40, %v703_v29  ;;  %v1065_v21 = vld [vmem:[%s2163_s30 + $0x1b0] sm:$0xff] }
 0x10d   : > { %1143 = vst [vmem:[%s2220_s10 + $0x20] sm:$0xff] %v1079_v22  ;;  %v919_v32 = vadd.f32 %v2209_v41, %v851_v26  ;;  %v935_v33 = vadd.f32 %v2209_v41, %v867_v27  ;;  %v1018_v26 = vld [vmem:[%s2163_s30 + $0x38] sm:$0xff] }
 0x10e   : > { %1159 = vst [vmem:[%s2220_s10 + $0xa0] sm:$0xff] %v1095_v23  ;;  %v888_v36 = vadd.f32 %v2209_v41, %v820_v30  ;;  %v904_v37 = vadd.f32 %v2209_v41, %v836_v31  ;;  %v1034_v27 = vld [vmem:[%s2163_s30 + $0xb8] sm:$0xff] }
 0x10f   : > { %v983_v38 = vmax.f32 %v919_v32, 0.0  ;;  %v999_v39 = vmax.f32 %v935_v33, 0.0 }
 0x110   : > { %v952_v44 = vmax.f32 %v888_v36, 0.0  ;;  %v968_v45 = vmax.f32 %v904_v37, 0.0 }
 0x111   : > { %v1111_v46 = vadd.f32 %v1047_v34, %v983_v38  ;;  %v1127_v47 = vadd.f32 %v1063_v35, %v999_v39 }
 0x112   : > { %v1080_v48 = vadd.f32 %v1016_v42, %v952_v44  ;;  %v1096_v49 = vadd.f32 %v1032_v43, %v968_v45  ;;  %v743_v50 = vpop.f32.mrf.mxu2  ;;  %v783_v51 = vpop.f32.mrf.mxu3 }
 0x113   : > { %1175 = vst [vmem:[%s2220_s10 + $0x120] sm:$0xff] %v1111_v46  ;;  %v852_v52 = vmul.f32 %v2204_v40, %v743_v50  ;;  %v868_v53 = vmul.f32 %v2204_v40, %v783_v51  ;;  %v666_v54 = vpop.f32.mrf.mxu0  ;;  %v706_v55 = vpop.f32.mrf.mxu1  ;;  %v1050_v46 = vld [vmem:[%s2163_s30 + $0x138] sm:$0xff] }
 0x114   : > { %1191 = vst [vmem:[%s2220_s10 + $0x1a0] sm:$0xff] %v1127_v47  ;;  %v821_v56 = vmul.f32 %v2204_v40, %v666_v54  ;;  %v837_v57 = vmul.f32 %v2204_v40, %v706_v55  ;;  %v1066_v47 = vld [vmem:[%s2163_s30 + $0x1b8] sm:$0xff] }
 0x115   : > { %1144 = vst [vmem:[%s2220_s10 + $0x28] sm:$0xff] %v1080_v48  ;;  %v920_v58 = vadd.f32 %v2209_v41, %v852_v52  ;;  %v936_v59 = vadd.f32 %v2209_v41, %v868_v53  ;;  %v1019_v52 = vld [vmem:[%s2163_s30 + $0x40] sm:$0xff] }
 0x116   : > { %1160 = vst [vmem:[%s2220_s10 + $0xa8] sm:$0xff] %v1096_v49  ;;  %v889_v62 = vadd.f32 %v2209_v41, %v821_v56  ;;  %v905_v63 = vadd.f32 %v2209_v41, %v837_v57  ;;  %v1035_v53 = vld [vmem:[%s2163_s30 + $0xc0] sm:$0xff] }
 0x117   : > { %v984_v0 = vmax.f32 %v920_v58, 0.0  ;;  %v1000_v1 = vmax.f32 %v936_v59, 0.0 }
 0x118   : > { %v953_v4 = vmax.f32 %v889_v62, 0.0  ;;  %v969_v5 = vmax.f32 %v905_v63, 0.0 }
 0x119   : > { %v1112_v6 = vadd.f32 %v1048_v60, %v984_v0  ;;  %v1128_v7 = vadd.f32 %v1064_v61, %v1000_v1 }
 0x11a   : > { %v1081_v8 = vadd.f32 %v1017_v2, %v953_v4  ;;  %v1097_v9 = vadd.f32 %v1033_v3, %v969_v5  ;;  %v746_v10 = vpop.f32.mrf.mxu2  ;;  %v786_v11 = vpop.f32.mrf.mxu3 }
 0x11b   : > { %1176 = vst [vmem:[%s2220_s10 + $0x128] sm:$0xff] %v1112_v6  ;;  %v853_v12 = vmul.f32 %v2204_v40, %v746_v10  ;;  %v869_v13 = vmul.f32 %v2204_v40, %v786_v11  ;;  %v668_v14 = vpop.f32.mrf.mxu0  ;;  %v708_v15 = vpop.f32.mrf.mxu1  ;;  %v1051_v6 = vld [vmem:[%s2163_s30 + $0x140] sm:$0xff] }
 0x11c   : > { %1192 = vst [vmem:[%s2220_s10 + $0x1a8] sm:$0xff] %v1128_v7  ;;  %v822_v16 = vmul.f32 %v2204_v40, %v668_v14  ;;  %v838_v17 = vmul.f32 %v2204_v40, %v708_v15  ;;  %v1067_v7 = vld [vmem:[%s2163_s30 + $0x1c0] sm:$0xff] }
 0x11d   : > { %1145 = vst [vmem:[%s2220_s10 + $0x30] sm:$0xff] %v1081_v8  ;;  %v921_v18 = vadd.f32 %v2209_v41, %v853_v12  ;;  %v937_v19 = vadd.f32 %v2209_v41, %v869_v13  ;;  %v1020_v12 = vld [vmem:[%s2163_s30 + $0x48] sm:$0xff] }
 0x11e   : > { %1161 = vst [vmem:[%s2220_s10 + $0xb0] sm:$0xff] %v1097_v9  ;;  %v890_v22 = vadd.f32 %v2209_v41, %v822_v16  ;;  %v906_v23 = vadd.f32 %v2209_v41, %v838_v17  ;;  %v1036_v13 = vld [vmem:[%s2163_s30 + $0xc8] sm:$0xff] }
 0x11f   : > { %v985_v24 = vmax.f32 %v921_v18, 0.0  ;;  %v1001_v25 = vmax.f32 %v937_v19, 0.0 }
 0x120   : > { %v954_v28 = vmax.f32 %v890_v22, 0.0  ;;  %v970_v29 = vmax.f32 %v906_v23, 0.0 }
 0x121   : > { %v1113_v30 = vadd.f32 %v1049_v20, %v985_v24  ;;  %v1129_v31 = vadd.f32 %v1065_v21, %v1001_v25 }
 0x122   : > { %v1082_v32 = vadd.f32 %v1018_v26, %v954_v28  ;;  %v1098_v33 = vadd.f32 %v1034_v27, %v970_v29  ;;  %v748_v34 = vpop.f32.mrf.mxu2  ;;  %v788_v35 = vpop.f32.mrf.mxu3 }
 0x123   : > { %1177 = vst [vmem:[%s2220_s10 + $0x130] sm:$0xff] %v1113_v30  ;;  %v854_v36 = vmul.f32 %v2204_v40, %v748_v34  ;;  %v870_v37 = vmul.f32 %v2204_v40, %v788_v35  ;;  %v671_v38 = vpop.f32.mrf.mxu0  ;;  %v711_v39 = vpop.f32.mrf.mxu1  ;;  %v1052_v30 = vld [vmem:[%s2163_s30 + $0x148] sm:$0xff] }
 0x124   : > { %1193 = vst [vmem:[%s2220_s10 + $0x1b0] sm:$0xff] %v1129_v31  ;;  %v823_v42 = vmul.f32 %v2204_v40, %v671_v38  ;;  %v839_v43 = vmul.f32 %v2204_v40, %v711_v39  ;;  %v1068_v31 = vld [vmem:[%s2163_s30 + $0x1c8] sm:$0xff] }
 0x125   : > { %1146 = vst [vmem:[%s2220_s10 + $0x38] sm:$0xff] %v1082_v32  ;;  %v922_v44 = vadd.f32 %v2209_v41, %v854_v36  ;;  %v938_v45 = vadd.f32 %v2209_v41, %v870_v37  ;;  %v1021_v36 = vld [vmem:[%s2163_s30 + $0x50] sm:$0xff] }
 0x126   : > { %1162 = vst [vmem:[%s2220_s10 + $0xb8] sm:$0xff] %v1098_v33  ;;  %v891_v48 = vadd.f32 %v2209_v41, %v823_v42  ;;  %v907_v49 = vadd.f32 %v2209_v41, %v839_v43  ;;  %v1037_v37 = vld [vmem:[%s2163_s30 + $0xd0] sm:$0xff] }
 0x127   : > { %v986_v50 = vmax.f32 %v922_v44, 0.0  ;;  %v1002_v51 = vmax.f32 %v938_v45, 0.0 }
 0x128   : > { %v955_v54 = vmax.f32 %v891_v48, 0.0  ;;  %v971_v55 = vmax.f32 %v907_v49, 0.0 }
 0x129   : > { %v1114_v56 = vadd.f32 %v1050_v46, %v986_v50  ;;  %v1130_v57 = vadd.f32 %v1066_v47, %v1002_v51 }
 0x12a   : > { %v1083_v58 = vadd.f32 %v1019_v52, %v955_v54  ;;  %v1099_v59 = vadd.f32 %v1035_v53, %v971_v55  ;;  %v751_v60 = vpop.f32.mrf.mxu2  ;;  %v791_v61 = vpop.f32.mrf.mxu3 }
 0x12b   : > { %1178 = vst [vmem:[%s2220_s10 + $0x138] sm:$0xff] %v1114_v56  ;;  %v855_v62 = vmul.f32 %v2204_v40, %v751_v60  ;;  %v871_v63 = vmul.f32 %v2204_v40, %v791_v61  ;;  %v673_v0 = vpop.f32.mrf.mxu0  ;;  %v713_v1 = vpop.f32.mrf.mxu1  ;;  %v1053_v56 = vld [vmem:[%s2163_s30 + $0x150] sm:$0xff] }
 0x12c   : > { %1194 = vst [vmem:[%s2220_s10 + $0x1b8] sm:$0xff] %v1130_v57  ;;  %v824_v2 = vmul.f32 %v2204_v40, %v673_v0  ;;  %v840_v3 = vmul.f32 %v2204_v40, %v713_v1  ;;  %v1069_v57 = vld [vmem:[%s2163_s30 + $0x1d0] sm:$0xff] }
 0x12d   : > { %1147 = vst [vmem:[%s2220_s10 + $0x40] sm:$0xff] %v1083_v58  ;;  %v923_v4 = vadd.f32 %v2209_v41, %v855_v62  ;;  %v939_v5 = vadd.f32 %v2209_v41, %v871_v63  ;;  %v1022_v62 = vld [vmem:[%s2163_s30 + $0x58] sm:$0xff] }
 0x12e   : > { %1163 = vst [vmem:[%s2220_s10 + $0xc0] sm:$0xff] %v1099_v59  ;;  %v892_v8 = vadd.f32 %v2209_v41, %v824_v2  ;;  %v908_v9 = vadd.f32 %v2209_v41, %v840_v3  ;;  %v1038_v63 = vld [vmem:[%s2163_s30 + $0xd8] sm:$0xff] }
 0x12f   : > { %v987_v10 = vmax.f32 %v923_v4, 0.0  ;;  %v1003_v11 = vmax.f32 %v939_v5, 0.0 }
 0x130   : > { %v956_v14 = vmax.f32 %v892_v8, 0.0  ;;  %v972_v15 = vmax.f32 %v908_v9, 0.0 }
 0x131   : > { %v1115_v16 = vadd.f32 %v1051_v6, %v987_v10  ;;  %v1131_v17 = vadd.f32 %v1067_v7, %v1003_v11 }
 0x132   : > { %v1084_v18 = vadd.f32 %v1020_v12, %v956_v14  ;;  %v1100_v19 = vadd.f32 %v1036_v13, %v972_v15  ;;  %v753_v20 = vpop.f32.mrf.mxu2  ;;  %v793_v21 = vpop.f32.mrf.mxu3 }
 0x133   : > { %1179 = vst [vmem:[%s2220_s10 + $0x140] sm:$0xff] %v1115_v16  ;;  %v856_v22 = vmul.f32 %v2204_v40, %v753_v20  ;;  %v872_v23 = vmul.f32 %v2204_v40, %v793_v21  ;;  %v676_v24 = vpop.f32.mrf.mxu0  ;;  %v716_v25 = vpop.f32.mrf.mxu1  ;;  %v1054_v16 = vld [vmem:[%s2163_s30 + $0x158] sm:$0xff] }
 0x134   : > { %1195 = vst [vmem:[%s2220_s10 + $0x1c0] sm:$0xff] %v1131_v17  ;;  %v825_v26 = vmul.f32 %v2204_v40, %v676_v24  ;;  %v841_v27 = vmul.f32 %v2204_v40, %v716_v25  ;;  %v1070_v17 = vld [vmem:[%s2163_s30 + $0x1d8] sm:$0xff] }
 0x135   : > { %1148 = vst [vmem:[%s2220_s10 + $0x48] sm:$0xff] %v1084_v18  ;;  %v924_v28 = vadd.f32 %v2209_v41, %v856_v22  ;;  %v940_v29 = vadd.f32 %v2209_v41, %v872_v23  ;;  %v1023_v22 = vld [vmem:[%s2163_s30 + $0x60] sm:$0xff] }
 0x136   : > { %1164 = vst [vmem:[%s2220_s10 + $0xc8] sm:$0xff] %v1100_v19  ;;  %v893_v32 = vadd.f32 %v2209_v41, %v825_v26  ;;  %v909_v33 = vadd.f32 %v2209_v41, %v841_v27  ;;  %v1039_v23 = vld [vmem:[%s2163_s30 + $0xe0] sm:$0xff] }
 0x137   : > { %v988_v34 = vmax.f32 %v924_v28, 0.0  ;;  %v1004_v35 = vmax.f32 %v940_v29, 0.0 }
 0x138   : > { %v957_v38 = vmax.f32 %v893_v32, 0.0  ;;  %v973_v39 = vmax.f32 %v909_v33, 0.0 }
 0x139   : > { %v1116_v42 = vadd.f32 %v1052_v30, %v988_v34  ;;  %v1132_v43 = vadd.f32 %v1068_v31, %v1004_v35 }
 0x13a   : > { %v1085_v44 = vadd.f32 %v1021_v36, %v957_v38  ;;  %v1101_v45 = vadd.f32 %v1037_v37, %v973_v39  ;;  %v756_v46 = vpop.f32.mrf.mxu2  ;;  %v796_v47 = vpop.f32.mrf.mxu3 }
 0x13b   : > { %1180 = vst [vmem:[%s2220_s10 + $0x148] sm:$0xff] %v1116_v42  ;;  %v857_v48 = vmul.f32 %v2204_v40, %v756_v46  ;;  %v873_v49 = vmul.f32 %v2204_v40, %v796_v47  ;;  %v678_v50 = vpop.f32.mrf.mxu0  ;;  %v718_v51 = vpop.f32.mrf.mxu1  ;;  %v1055_v42 = vld [vmem:[%s2163_s30 + $0x160] sm:$0xff] }
 0x13c   : > { %1196 = vst [vmem:[%s2220_s10 + $0x1c8] sm:$0xff] %v1132_v43  ;;  %v826_v52 = vmul.f32 %v2204_v40, %v678_v50  ;;  %v842_v53 = vmul.f32 %v2204_v40, %v718_v51  ;;  %v1071_v43 = vld [vmem:[%s2163_s30 + $0x1e0] sm:$0xff] }
 0x13d   : > { %1149 = vst [vmem:[%s2220_s10 + $0x50] sm:$0xff] %v1085_v44  ;;  %v925_v54 = vadd.f32 %v2209_v41, %v857_v48  ;;  %v941_v55 = vadd.f32 %v2209_v41, %v873_v49  ;;  %v1024_v48 = vld [vmem:[%s2163_s30 + $0x68] sm:$0xff] }
 0x13e   : > { %1165 = vst [vmem:[%s2220_s10 + $0xd0] sm:$0xff] %v1101_v45  ;;  %v894_v58 = vadd.f32 %v2209_v41, %v826_v52  ;;  %v910_v59 = vadd.f32 %v2209_v41, %v842_v53  ;;  %v1040_v49 = vld [vmem:[%s2163_s30 + $0xe8] sm:$0xff] }
 0x13f   : > { %v989_v60 = vmax.f32 %v925_v54, 0.0  ;;  %v1005_v61 = vmax.f32 %v941_v55, 0.0 }
 0x140   : > { %v958_v0 = vmax.f32 %v894_v58, 0.0  ;;  %v974_v1 = vmax.f32 %v910_v59, 0.0 }
 0x141   : > { %v1117_v2 = vadd.f32 %v1053_v56, %v989_v60  ;;  %v1133_v3 = vadd.f32 %v1069_v57, %v1005_v61 }
 0x142   : > { %v1086_v4 = vadd.f32 %v1022_v62, %v958_v0  ;;  %v1102_v5 = vadd.f32 %v1038_v63, %v974_v1  ;;  %v758_v6 = vpop.f32.mrf.mxu2  ;;  %v798_v7 = vpop.f32.mrf.mxu3 }
 0x143   : > { %1181 = vst [vmem:[%s2220_s10 + $0x150] sm:$0xff] %v1117_v2  ;;  %v858_v8 = vmul.f32 %v2204_v40, %v758_v6  ;;  %v874_v9 = vmul.f32 %v2204_v40, %v798_v7  ;;  %v681_v10 = vpop.f32.mrf.mxu0  ;;  %v721_v11 = vpop.f32.mrf.mxu1  ;;  %v1056_v2 = vld [vmem:[%s2163_s30 + $0x168] sm:$0xff] }
 0x144   : > { %1197 = vst [vmem:[%s2220_s10 + $0x1d0] sm:$0xff] %v1133_v3  ;;  %v827_v12 = vmul.f32 %v2204_v40, %v681_v10  ;;  %v843_v13 = vmul.f32 %v2204_v40, %v721_v11  ;;  %v1072_v3 = vld [vmem:[%s2163_s30 + $0x1e8] sm:$0xff] }
 0x145   : > { %1150 = vst [vmem:[%s2220_s10 + $0x58] sm:$0xff] %v1086_v4  ;;  %v926_v14 = vadd.f32 %v2209_v41, %v858_v8  ;;  %v942_v15 = vadd.f32 %v2209_v41, %v874_v9  ;;  %v1025_v8 = vld [vmem:[%s2163_s30 + $0x70] sm:$0xff] }
 0x146   : > { %1166 = vst [vmem:[%s2220_s10 + $0xd8] sm:$0xff] %v1102_v5  ;;  %v895_v18 = vadd.f32 %v2209_v41, %v827_v12  ;;  %v911_v19 = vadd.f32 %v2209_v41, %v843_v13  ;;  %v1041_v9 = vld [vmem:[%s2163_s30 + $0xf0] sm:$0xff] }
 0x147   : > { %v990_v20 = vmax.f32 %v926_v14, 0.0  ;;  %v1006_v21 = vmax.f32 %v942_v15, 0.0 }
 0x148   : > { %v959_v24 = vmax.f32 %v895_v18, 0.0  ;;  %v975_v25 = vmax.f32 %v911_v19, 0.0 }
 0x149   : > { %v1118_v26 = vadd.f32 %v1054_v16, %v990_v20  ;;  %v1134_v27 = vadd.f32 %v1070_v17, %v1006_v21 }
 0x14a   : > { %v1087_v28 = vadd.f32 %v1023_v22, %v959_v24  ;;  %v1103_v29 = vadd.f32 %v1039_v23, %v975_v25  ;;  %v761_v30 = vpop.f32.mrf.mxu2  ;;  %v801_v31 = vpop.f32.mrf.mxu3 }
 0x14b   : > { %1182 = vst [vmem:[%s2220_s10 + $0x158] sm:$0xff] %v1118_v26  ;;  %v859_v32 = vmul.f32 %v2204_v40, %v761_v30  ;;  %v875_v33 = vmul.f32 %v2204_v40, %v801_v31  ;;  %v683_v34 = vpop.f32.mrf.mxu0  ;;  %v723_v35 = vpop.f32.mrf.mxu1  ;;  %v1057_v26 = vld [vmem:[%s2163_s30 + $0x170] sm:$0xff] }
 0x14c   : > { %1198 = vst [vmem:[%s2220_s10 + $0x1d8] sm:$0xff] %v1134_v27  ;;  %v828_v36 = vmul.f32 %v2204_v40, %v683_v34  ;;  %v844_v37 = vmul.f32 %v2204_v40, %v723_v35  ;;  %v1073_v27 = vld [vmem:[%s2163_s30 + $0x1f0] sm:$0xff] }
 0x14d   : > { %1151 = vst [vmem:[%s2220_s10 + $0x60] sm:$0xff] %v1087_v28  ;;  %v927_v38 = vadd.f32 %v2209_v41, %v859_v32  ;;  %v943_v39 = vadd.f32 %v2209_v41, %v875_v33  ;;  %v1026_v32 = vld [vmem:[%s2163_s30 + $0x78] sm:$0xff] }
 0x14e   : > { %1167 = vst [vmem:[%s2220_s10 + $0xe0] sm:$0xff] %v1103_v29  ;;  %v896_v44 = vadd.f32 %v2209_v41, %v828_v36  ;;  %v912_v45 = vadd.f32 %v2209_v41, %v844_v37  ;;  %v1042_v33 = vld [vmem:[%s2163_s30 + $0xf8] sm:$0xff] }
 0x14f   : > { %v991_v46 = vmax.f32 %v927_v38, 0.0  ;;  %v1007_v47 = vmax.f32 %v943_v39, 0.0 }
 0x150   : > { %v960_v50 = vmax.f32 %v896_v44, 0.0  ;;  %v976_v51 = vmax.f32 %v912_v45, 0.0 }
 0x151   : > { %v1119_v52 = vadd.f32 %v1055_v42, %v991_v46  ;;  %v1135_v53 = vadd.f32 %v1071_v43, %v1007_v47 }
 0x152   : > { %v1088_v54 = vadd.f32 %v1024_v48, %v960_v50  ;;  %v1104_v55 = vadd.f32 %v1040_v49, %v976_v51  ;;  %v763_v56 = vpop.f32.mrf.mxu2  ;;  %v803_v57 = vpop.f32.mrf.mxu3  ;;  %v1058_v48 = vld [vmem:[%s2163_s30 + $0x178] sm:$0xff] }
 0x153   : > { %1183 = vst [vmem:[%s2220_s10 + $0x160] sm:$0xff] %v1119_v52  ;;  %v860_v58 = vmul.f32 %v2204_v40, %v763_v56  ;;  %v876_v59 = vmul.f32 %v2204_v40, %v803_v57  ;;  %v686_v60 = vpop.f32.mrf.mxu0  ;;  %v726_v61 = vpop.f32.mrf.mxu1  ;;  %v1074_v49 = vld [vmem:[%s2163_s30 + $0x1f8] sm:$0xff] }
 0x154   : > { %1199 = vst [vmem:[%s2220_s10 + $0x1e0] sm:$0xff] %v1135_v53  ;;  %v829_v62 = vmul.f32 %v2204_v40, %v686_v60  ;;  %v845_v63 = vmul.f32 %v2204_v40, %v726_v61 }
 0x155   : > { %1152 = vst [vmem:[%s2220_s10 + $0x68] sm:$0xff] %v1088_v54  ;;  %v928_v0 = vadd.f32 %v2209_v41, %v860_v58  ;;  %v944_v1 = vadd.f32 %v2209_v41, %v876_v59 }
 0x156   : > { %1168 = vst [vmem:[%s2220_s10 + $0xe8] sm:$0xff] %v1104_v55  ;;  %v897_v4 = vadd.f32 %v2209_v41, %v829_v62  ;;  %v913_v5 = vadd.f32 %v2209_v41, %v845_v63 }
 0x157   : > { %v992_v6 = vmax.f32 %v928_v0, 0.0  ;;  %v1008_v7 = vmax.f32 %v944_v1, 0.0 }
 0x158   : > { %v961_v10 = vmax.f32 %v897_v4, 0.0  ;;  %v977_v11 = vmax.f32 %v913_v5, 0.0 }
 0x159   : > { %v1120_v12 = vadd.f32 %v1056_v2, %v992_v6  ;;  %v1136_v13 = vadd.f32 %v1072_v3, %v1008_v7 }
 0x15a   : > { %v1089_v14 = vadd.f32 %v1025_v8, %v961_v10  ;;  %v1105_v15 = vadd.f32 %v1041_v9, %v977_v11  ;;  %v766_v16 = vpop.f32.mrf.mxu2  ;;  %v806_v17 = vpop.f32.mrf.mxu3 }
 0x15b   : > { %1184 = vst [vmem:[%s2220_s10 + $0x168] sm:$0xff] %v1120_v12  ;;  %v861_v18 = vmul.f32 %v2204_v40, %v766_v16  ;;  %v877_v19 = vmul.f32 %v2204_v40, %v806_v17  ;;  %v688_v20 = vpop.f32.mrf.mxu0  ;;  %v728_v21 = vpop.f32.mrf.mxu1 }
 0x15c   : > { %1200 = vst [vmem:[%s2220_s10 + $0x1e8] sm:$0xff] %v1136_v13  ;;  %v830_v22 = vmul.f32 %v2204_v40, %v688_v20  ;;  %v846_v23 = vmul.f32 %v2204_v40, %v728_v21 }
 0x15d   : > { %1153 = vst [vmem:[%s2220_s10 + $0x70] sm:$0xff] %v1089_v14  ;;  %v929_v24 = vadd.f32 %v2209_v41, %v861_v18  ;;  %v945_v25 = vadd.f32 %v2209_v41, %v877_v19 }
 0x15e   : > { %1169 = vst [vmem:[%s2220_s10 + $0xf0] sm:$0xff] %v1105_v15  ;;  %v898_v28 = vadd.f32 %v2209_v41, %v830_v22  ;;  %v914_v29 = vadd.f32 %v2209_v41, %v846_v23 }
 0x15f   : > { %v993_v30 = vmax.f32 %v929_v24, 0.0  ;;  %v1009_v31 = vmax.f32 %v945_v25, 0.0 }
 0x160   : > { %v962_v34 = vmax.f32 %v898_v28, 0.0  ;;  %v978_v35 = vmax.f32 %v914_v29, 0.0 }
 0x161   : > { %v1121_v36 = vadd.f32 %v1057_v26, %v993_v30  ;;  %v1137_v37 = vadd.f32 %v1073_v27, %v1009_v31 }
 0x162   : > { %v1090_v38 = vadd.f32 %v1026_v32, %v962_v34  ;;  %v1106_v39 = vadd.f32 %v1042_v33, %v978_v35  ;;  %v768_v42 = vpop.f32.mrf.mxu2  ;;  %v808_v43 = vpop.f32.mrf.mxu3 }
 0x163   : > { %1185 = vst [vmem:[%s2220_s10 + $0x170] sm:$0xff] %v1121_v36  ;;  %v862_v44 = vmul.f32 %v2204_v40, %v768_v42  ;;  %v878_v45 = vmul.f32 %v2204_v40, %v808_v43 }
 0x164   : > { %1201 = vst [vmem:[%s2220_s10 + $0x1f0] sm:$0xff] %v1137_v37 }
 0x165   : > { %1154 = vst [vmem:[%s2220_s10 + $0x78] sm:$0xff] %v1090_v38  ;;  %v930_v46 = vadd.f32 %v2209_v41, %v862_v44  ;;  %v946_v47 = vadd.f32 %v2209_v41, %v878_v45 }
 0x166   : > { %1170 = vst [vmem:[%s2220_s10 + $0xf8] sm:$0xff] %v1106_v39 }
 0x167   : > { %v994_v40 = vmax.f32 %v930_v46, 0.0  ;;  %v1010_v50 = vmax.f32 %v946_v47, 0.0 }
 0x169   : > { %v1122_v51 = vadd.f32 %v1058_v48, %v994_v40  ;;  %v1138_v52 = vadd.f32 %v1074_v49, %v1010_v50 }
 0x16b   : > { %1186 = vst [vmem:[%s2220_s10 + $0x178] sm:$0xff] %v1122_v51 }
 0x16c   : > { %1202 = vst [vmem:[%s2220_s10 + $0x1f8] sm:$0xff] %v1138_v52 }
 0x16d   : > { %1832 = shalt.err (!%p1829_p4)
}
 0x16e   : > { %s1942_s17 = smov 128   ;;  %s1943_s13 = smov 8  }
 0x16f   : > { %1597 = dma.vmem_to_hbm [thread:$0]  (%p2111_p9), %s1219_s1, 8192, %s1221_s27, %s1204_s21, %s1942_s17, %s1942_s17, %s1943_s13  }
 0x170 PF: > { %s2560_s10 = sld [smem:[#allocation13_spill]]  ;;  %p1617_p13 = scmp.ge.s32.totalorder %s1935_s28, 2 }
 0x172   : > { %p1611_p1 = pnand %p1617_p13, %p2063_p8 }
 0x174   : > { %p1612_p0 = pneg %p1611_p1 }
 0x176   : > { %s1235_s9 = sand.u32 1, %s2560_s10  }
 0x177   : > { %s1236_s24 = scalar_lea.sflag [#allocation4], %s1235_s9 }
 0x178   : > { %1890 = dma.done.wait (%p1612_p0), %s1236_s24, 8192  }
 0x179   : > { %1892 = vsyncadd (%p1612_p0), %s1236_s24, 4294959104  ;;  %s22_s28 = sadd.s32 1, %s1935_s28   ;;  %s2562_s25 = sld [smem:[#allocation14_spill]] }
 0x17a   : > { %p19_p3 = scmp.ge.s32.totalorder %s22_s28, 6   ;;  %s2563_s23 = sld [smem:[#allocation19_spill]] }
 0x17b   : > { %s2564_s12 = sld [smem:[#allocation15_spill]]  ;;  %s2567_s18 = smov %s1899_s19 }
 0x17c   : > { %s2565_s11 = sld [smem:[#allocation16_spill]]  ;;  %s2568_s19 = smov %s1903_s20 }
 0x17d   : > { %s2566_s27 = sld [smem:[#allocation17_spill]]  ;;  %s2569_s20 = smov %s2131_s0 }
 0x17e   : > { %s2570_s21 = smov %s1911_s22  ;;  %s2572_s24 = smov %s1927_s26 }
 0x17f   : > { %s2571_s22 = smov %s2562_s25  ;;  %21 = sbr.rel (!%p19_p3) target bundleno = 14 (0xe), region = 100 }
 0x181   : > { %s2573_s25 = smov %s2564_s12 }
 0x182   : > { %s2574_s26 = smov %s2565_s11 }
 0x184   :  { %1242 = vsyncpa [#allocation3], 1 }
 0x185   :  { %1244 = vsyncpa [#allocation3 + $0x1], 1 }
 0x186   :  { %1245 = vsyncpa [#allocation6], 1 }
 0x187   :  { %1246 = vsyncpa [#allocation4], 1 }
 0x188   :  { %1248 = vsyncpa [#allocation4 + $0x1], 1 }

</bundles_post_ra>
